<compile_context>
chip_gen: v7x
topology: tpu7x:2x2x1
jax: 0.10.0
libtpu: 0.0.40
codegen_flags: <defaults>
</compile_context>

<pallas_src>
import functools

import jax
import jax.numpy as jnp
from jax.experimental import pallas as pl
from jax.experimental.pallas import tpu as pltpu

_MASK = -1e9       # fill for padded logit columns (exp underflows to 0)
_LANE = 128
_SUBLANE = 8


def _round_up(x, m):
    return ((x + m - 1) // m) * m


def _pad2d(x, rows, cols, value=0.0):
    r, c = x.shape
    if r == rows and c == cols:
        return x
    return jnp.pad(x, ((0, rows - r), (0, cols - c)), constant_values=value)


def _vmem_capacity_bytes():
    try:
        return int(pltpu.get_tpu_info().vmem_capacity_bytes)
    except Exception:
        return 64 * 1024 * 1024      # conservative fallback (v7x per-TC VMEM)


# ---------------------------------------------------------------------------
# Kernel 1: batch-independent Topic matrices   Topic = beta @ alpha.T
# (alpha is pre-transposed in the wrapper, so this is a plain matmul; the grid
#  runs over the mod/feature axis so huge mod dims never need one giant block)
# ---------------------------------------------------------------------------
def _topic_kernel(beta_ref, alpha_t_ref, topic_ref):
    topic_ref[...] = jnp.dot(beta_ref[...], alpha_t_ref[...],
                             preferred_element_type=jnp.float32)


def _run_topic(beta_p, alpha_t_p, vmem_cap):
    z_p, emd_p = beta_p.shape
    mod_p = alpha_t_p.shape[1]
    tile_f = _LANE
    for cand in (1024, 512, 256):
        if mod_p % cand == 0:
            tile_f = cand
            break
    cd_b = beta_p.dtype.itemsize
    fp = z_p * emd_p * cd_b + 2 * tile_f * (emd_p * cd_b + z_p * 4)
    vmem_limit = int(min(0.85 * vmem_cap, max(2 * fp, 8 * 1024 * 1024)))
    return pl.pallas_call(
        _topic_kernel,
        grid=(mod_p // tile_f,),
        out_shape=jax.ShapeDtypeStruct((z_p, mod_p), jnp.float32),
        in_specs=[pl.BlockSpec((z_p, emd_p), lambda j: (0, 0),
                               pipeline_mode=pl.Buffered(1)),
                  pl.BlockSpec((emd_p, tile_f), lambda j: (0, j))],
        out_specs=pl.BlockSpec((z_p, tile_f), lambda j: (0, j)),
        compiler_params=pltpu.CompilerParams(
            dimension_semantics=("parallel",),
            vmem_limit_bytes=vmem_limit),
    )(beta_p, alpha_t_p)


# ---------------------------------------------------------------------------
# Kernel 2: per-row-tile reconstruction + (log-)softmax for ONE modality
# ---------------------------------------------------------------------------
def _recon_mod_kernel(theta_ref, theta_m_ref, onehot_ref,
                      beta_ref, beta_m_ref, alpha_t_ref, bias_ref,
                      out_ref, *, cross_prediction):
    cd = theta_ref.dtype                       # matmul operand dtype (f32/bf16)

    m = jnp.dot(theta_m_ref[...], beta_m_ref[...],
                preferred_element_type=jnp.float32)
    m = m + jnp.dot(theta_ref[...], beta_ref[...],
                    preferred_element_type=jnp.float32)

    r = jnp.dot(m.astype(cd), alpha_t_ref[...],
                preferred_element_type=jnp.float32)
    # exact batch-bias gather: one_hot(batch) @ bias, f32 operands (tiny K)
    r = r + jnp.dot(onehot_ref[...], bias_ref[...],
                    preferred_element_type=jnp.float32)

    r = r - jnp.max(r, axis=-1, keepdims=True)
    if cross_prediction:                       # softmax, f32 epilogue
        e = jnp.exp(r)
        out = e * pl.reciprocal(jnp.sum(e, axis=-1, keepdims=True), approx=True)
    else:                                      # log_softmax, f32 epilogue
        out = r - jnp.log(jnp.sum(jnp.exp(r), axis=-1, keepdims=True))
    out_ref[...] = out.astype(out_ref.dtype)


def _run_modality(theta_p, theta_m_p, onehot_p, beta_p, beta_m_p,
                  alpha_t_p, bias_p, *, tile_n, out_dtype, cross_prediction,
                  vmem_limit):
    n_p, z_p = theta_p.shape
    dim_p = theta_m_p.shape[1]
    nb_p = onehot_p.shape[1]
    emd_p, mod_p = alpha_t_p.shape

    def row(cols):
        return pl.BlockSpec((tile_n, cols), lambda i: (i, 0))

    def resident(shape):
        # constant index_map -> DMA'd once; single-buffered to save VMEM
        return pl.BlockSpec(shape, lambda i: (0, 0),
                            pipeline_mode=pl.Buffered(1))

    kernel = functools.partial(_recon_mod_kernel,
                               cross_prediction=cross_prediction)
    return pl.pallas_call(
        kernel,
        grid=(n_p // tile_n,),
        out_shape=jax.ShapeDtypeStruct((n_p, mod_p), out_dtype),
        in_specs=[row(z_p), row(dim_p), row(nb_p),
                  resident((z_p, emd_p)), resident((dim_p, emd_p)),
                  resident((emd_p, mod_p)), resident((nb_p, mod_p))],
        out_specs=row(mod_p),
        compiler_params=pltpu.CompilerParams(
            dimension_semantics=("parallel",),
            vmem_limit_bytes=vmem_limit),
    )(theta_p, theta_m_p, onehot_p, beta_p, beta_m_p, alpha_t_p, bias_p)


# ---------------------------------------------------------------------------
# Wrapper
# ---------------------------------------------------------------------------
def decoder_dv_forward(theta, theta1, theta2, batch_indices, params,
                       cross_prediction=False, compute_dtype=jnp.bfloat16,
                       out_dtype=None, tile_n=None):
    """Returns (recon_log_mod1, recon_log_mod2, Topic_mod1, Topic_mod2)."""
    alpha1, alpha2 = params["alpha_mod1"], params["alpha_mod2"]
    beta, beta1, beta2 = params["beta"], params["beta1"], params["beta2"]
    bbias1, bbias2 = params["mod1_batch_bias"], params["mod2_batch_bias"]

    n, z_dim = theta.shape
    dim = theta1.shape[1]
    mod1_dim, emd_dim = alpha1.shape
    mod2_dim = alpha2.shape[0]
    num_batch = bbias1.shape[0]

    cd = jax.dtypes.canonicalize_dtype(compute_dtype)
    od = jax.dtypes.canonicalize_dtype(
        out_dtype if out_dtype is not None else compute_dtype)
    cd_b, od_b = cd.itemsize, od.itemsize

    # ---- padded (lane/sublane friendly) dims -------------------------------
    emd_p = _round_up(emd_dim, _LANE)
    mod1_p = _round_up(mod1_dim, _LANE)
    mod2_p = _round_up(mod2_dim, _LANE)
    z_p = _round_up(z_dim, _LANE)
    dim_p = _round_up(dim, _LANE)
    nb_p = _round_up(num_batch, _SUBLANE)
    mod_max_p = max(mod1_p, mod2_p)

    # ---- choose tile_n and VMEM limit from actual footprint ----------------
    cap = _vmem_capacity_bytes()
    budget = int(0.70 * cap)

    # per-modality footprint: single-buffered resident weights + 2x streamed
    resident_b = ((z_p + dim_p + mod_max_p) * emd_p) * cd_b + nb_p * mod_max_p * 4

    def footprint(tn):
        streamed = 2 * tn * ((z_p + dim_p) * cd_b + nb_p * 4 + mod_max_p * od_b)
        return resident_b + streamed

    if tile_n is None:
        tile_n = 512 if cap >= 96 * 1024 * 1024 else 256
    while tile_n > _SUBLANE and footprint(tile_n) > budget:
        tile_n //= 2
    tile_n = max(_SUBLANE, _round_up(tile_n, _SUBLANE))

    # ensure >= 2 grid steps when N allows, so v7x megacore splits the batch
    n8 = _round_up(n, _SUBLANE)
    tile_n = min(tile_n, n8)
    if n8 >= 2 * _SUBLANE and n8 <= tile_n:
        tile_n = _round_up(pl.cdiv(n8, 2), _SUBLANE)
    n_p = _round_up(n, tile_n)

    fp = footprint(tile_n)
    vmem_limit = int(min(0.85 * cap,
                         max(fp * 1.25 + 2 * 1024 * 1024, 16 * 1024 * 1024)))

    # ---- pad operands -------------------------------------------------------
    theta_p = _pad2d(theta, n_p, z_p).astype(cd)
    theta1_p = _pad2d(theta1, n_p, dim_p).astype(cd)
    theta2_p = _pad2d(theta2, n_p, dim_p).astype(cd)
    onehot = jax.nn.one_hot(batch_indices, num_batch, dtype=jnp.float32)
    onehot_p = _pad2d(onehot, n_p, nb_p)                       # stays f32
    beta_p = _pad2d(beta, z_p, emd_p).astype(cd)
    beta1_p = _pad2d(beta1, dim_p, emd_p).astype(cd)
    beta2_p = _pad2d(beta2, dim_p, emd_p).astype(cd)
    # alpha pre-transposed once here so kernels run plain A @ B (no in-kernel
    # transposes of the large alpha tiles)
    alpha1_t_p = _pad2d(alpha1.T, emd_p, mod1_p).astype(cd)
    alpha2_t_p = _pad2d(alpha2.T, emd_p, mod2_p).astype(cd)
    # biases stay f32; padded feature columns carry -1e9 so padded logits never
    # contribute to the (log-)softmax normalisation.
    bias1_p = _pad2d(_pad2d(bbias1, num_batch, mod1_p, value=_MASK), nb_p, mod1_p)
    bias2_p = _pad2d(_pad2d(bbias2, num_batch, mod2_p, value=_MASK), nb_p, mod2_p)

    # ---- kernel 1: Topic matrices (batch independent) ----------------------
    topic1_p = _run_topic(beta_p, alpha1_t_p, cap)
    topic2_p = _run_topic(beta_p, alpha2_t_p, cap)

    # ---- kernel 2: reconstruction, one call per modality -------------------
    recon1_p = _run_modality(theta_p, theta1_p, onehot_p, beta_p, beta1_p,
                             alpha1_t_p, bias1_p, tile_n=tile_n, out_dtype=od,
                             cross_prediction=cross_prediction,
                             vmem_limit=vmem_limit)
    recon2_p = _run_modality(theta_p, theta2_p, onehot_p, beta_p, beta2_p,
                             alpha2_t_p, bias2_p, tile_n=tile_n, out_dtype=od,
                             cross_prediction=cross_prediction,
                             vmem_limit=vmem_limit)

    recon1 = recon1_p[:n, :mod1_dim]
    recon2 = recon2_p[:n, :mod2_dim]
    topic1 = topic1_p[:z_dim, :mod1_dim]
    topic2 = topic2_p[:z_dim, :mod2_dim]
    return recon1, recon2, topic1, topic2


def init_params(key, mod1_dim, mod2_dim, z_dim, dim, emd_dim, num_batch):
    """Deterministic stand-in for torch.randn parameter init."""
    k1, k2, k3, k4, k5, k6, k7 = jax.random.split(key, 7)
    return {
        "alpha_mod1": jax.random.normal(k1, (mod1_dim, emd_dim), jnp.float32),
        "alpha_mod2": jax.random.normal(k2, (mod2_dim, emd_dim), jnp.float32),
        "beta":       jax.random.normal(k3, (z_dim, emd_dim), jnp.float32),
        "beta1":      jax.random.normal(k4, (dim, emd_dim), jnp.float32),
        "beta2":      jax.random.normal(k5, (dim, emd_dim), jnp.float32),
        "mod1_batch_bias": jax.random.normal(k6, (num_batch, mod1_dim), jnp.float32),
        "mod2_batch_bias": jax.random.normal(k7, (num_batch, mod2_dim), jnp.float32),
    }


def _reference(theta, theta1, theta2, batch_indices, params,
               cross_prediction=False, compute_dtype=jnp.float32):
    """Pure-JAX reference; compute_dtype mimics the kernel's matmul operand dtype."""
    cd = compute_dtype
    c = lambda x: x.astype(cd)
    f32 = jnp.float32
    a1, a2 = params["alpha_mod1"], params["alpha_mod2"]
    b, b1, b2 = params["beta"], params["beta1"], params["beta2"]
    bias1 = params["mod1_batch_bias"][batch_indices]
    bias2 = params["mod2_batch_bias"][batch_indices]

    m_share = jnp.dot(c(theta), c(b), preferred_element_type=f32)
    m1 = jnp.dot(c(theta1), c(b1), preferred_element_type=f32) + m_share
    m2 = jnp.dot(c(theta2), c(b2), preferred_element_type=f32) + m_share
    r1 = jnp.dot(c(m1), c(a1).T, preferred_element_type=f32) + bias1   # bias in f32
    r2 = jnp.dot(c(m2), c(a2).T, preferred_element_type=f32) + bias2
    if cross_prediction:
        o1, o2 = jax.nn.softmax(r1, axis=-1), jax.nn.softmax(r2, axis=-1)
    else:
        o1, o2 = jax.nn.log_softmax(r1, axis=-1), jax.nn.log_softmax(r2, axis=-1)
    t1 = jnp.dot(c(b), c(a1).T, preferred_element_type=f32)
    t2 = jnp.dot(c(b), c(a2).T, preferred_element_type=f32)
    return o1, o2, t1, t2


if __name__ == "__main__":
    N, mod1_dim, mod2_dim, z_dim, dim, emd_dim, num_batch = 8, 16, 24, 8, 12, 32, 4

    key = jax.random.PRNGKey(0)
    kp, kt, kt1, kt2, kb = jax.random.split(key, 5)
    params = init_params(kp, mod1_dim, mod2_dim, z_dim, dim, emd_dim, num_batch)

    theta = jax.nn.softmax(jax.random.normal(kt, (N, z_dim), jnp.float32), axis=-1)
    theta1 = jax.nn.softmax(jax.random.normal(kt1, (N, dim), jnp.float32), axis=-1)
    theta2 = jax.nn.softmax(jax.random.normal(kt2, (N, dim), jnp.float32), axis=-1)
    batch_indices = jax.random.randint(kb, (N,), 0, num_batch, dtype=jnp.int32)

    # ---- f32 path: exact check against the pure-JAX reference --------------
    fwd_f32 = jax.jit(functools.partial(decoder_dv_forward,
                                        cross_prediction=False,
                                        compute_dtype=jnp.float32,
                                        out_dtype=jnp.float32))
    r1, r2, t1, t2 = jax.block_until_ready(
        fwd_f32(theta, theta1, theta2, batch_indices, params))
    ref = _reference(theta, theta1, theta2, batch_indices, params,
                     cross_prediction=False, compute_dtype=jnp.float32)
    assert r1.shape == (N, mod1_dim) and r2.shape == (N, mod2_dim)
    assert t1.shape == (z_dim, mod1_dim) and t2.shape == (z_dim, mod2_dim)
    for got, want in zip((r1, r2, t1, t2), ref):
        assert jnp.allclose(got, want, atol=1e-3, rtol=1e-3), \
            float(jnp.max(jnp.abs(got - want)))

    # ---- bf16 perf config: bf16 matmul operands AND bf16 outputs -----------
    fwd_bf16 = jax.jit(functools.partial(decoder_dv_forward,
                                         cross_prediction=False,
                                         compute_dtype=jnp.bfloat16))
    r1b, r2b, t1b, t2b = jax.block_until_ready(
        fwd_bf16(theta, theta1, theta2, batch_indices, params))
    refb = _reference(theta, theta1, theta2, batch_indices, params,
                      cross_prediction=False, compute_dtype=jnp.bfloat16)
    for got, want in zip((r1b, r2b, t1b, t2b), refb):
        assert jnp.allclose(got.astype(jnp.float32), want,
                            atol=1e-1, rtol=2e-2), \
            float(jnp.max(jnp.abs(got.astype(jnp.float32) - want)))

    # ---- cross_prediction=True (softmax branch) smoke test ------------------
    fwd_x = jax.jit(functools.partial(decoder_dv_forward,
                                      cross_prediction=True,
                                      compute_dtype=jnp.float32,
                                      out_dtype=jnp.float32))
    p1, p2, _, _ = jax.block_until_ready(
        fwd_x(theta, theta1, theta2, batch_indices, params))
    assert bool(jnp.all(jnp.isfinite(p1))) and bool(jnp.all(jnp.isfinite(p2)))
    assert jnp.allclose(jnp.sum(p1, axis=-1), 1.0, atol=1e-2)
    assert jnp.allclose(jnp.sum(p2, axis=-1), 1.0, atol=1e-2)

    print("KERNEL_OK")
</pallas_src>

<mosaic_0001>
module attributes {stable_mosaic.version = 11 : i64} {
  func.func @_recon_mod_kernel(%arg0: i32, %arg1: memref<8x128xf32, #tpu.memory_space<vmem>>, %arg2: memref<8x128xf32, #tpu.memory_space<vmem>>, %arg3: memref<8x8xf32, #tpu.memory_space<vmem>>, %arg4: memref<128x128xf32, #tpu.memory_space<vmem>>, %arg5: memref<128x128xf32, #tpu.memory_space<vmem>>, %arg6: memref<128x128xf32, #tpu.memory_space<vmem>>, %arg7: memref<8x128xf32, #tpu.memory_space<vmem>>, %arg8: memref<8x128xf32, #tpu.memory_space<vmem>>) attributes {dimension_semantics = [#tpu.dimension_semantics<parallel>], iteration_bounds = array<i64: 1>, scalar_prefetch = 0 : i64, scratch_operands = 0 : i64, tpu.core_type = #tpu.core_type<tc>, window_params = [{transform_indices = @transform_0, window_bounds = array<i64: 8, 128>}, {transform_indices = @transform_1, window_bounds = array<i64: 8, 128>}, {transform_indices = @transform_2, window_bounds = array<i64: 8, 8>}, {pipeline_mode = #tpu.pipeline_mode<synchronous>, transform_indices = @transform_3, window_bounds = array<i64: 128, 128>}, {pipeline_mode = #tpu.pipeline_mode<synchronous>, transform_indices = @transform_4, window_bounds = array<i64: 128, 128>}, {pipeline_mode = #tpu.pipeline_mode<synchronous>, transform_indices = @transform_5, window_bounds = array<i64: 128, 128>}, {pipeline_mode = #tpu.pipeline_mode<synchronous>, transform_indices = @transform_6, window_bounds = array<i64: 8, 128>}, {transform_indices = @transform_7, window_bounds = array<i64: 8, 128>}]} {
    %c0 = arith.constant 0 : index
    %c0_0 = arith.constant 0 : index
    %0 = vector.load %arg2[%c0, %c0_0] : memref<8x128xf32, #tpu.memory_space<vmem>>, vector<8x128xf32>
    %c0_1 = arith.constant 0 : index
    %c0_2 = arith.constant 0 : index
    %1 = vector.load %arg5[%c0_1, %c0_2] : memref<128x128xf32, #tpu.memory_space<vmem>>, vector<128x128xf32>
    %cst = arith.constant dense<0.000000e+00> : vector<8x128xf32>
    %2 = tpu.matmul %0, %1, %cst {dimension_numbers = #tpu.dot_dimension_numbers<[1], [0], [0], [1], [0, 0, 1, 1], [], []>} : vector<8x128xf32>, vector<128x128xf32>, vector<8x128xf32> -> vector<8x128xf32>
    %c0_3 = arith.constant 0 : index
    %c0_4 = arith.constant 0 : index
    %3 = vector.load %arg1[%c0_3, %c0_4] : memref<8x128xf32, #tpu.memory_space<vmem>>, vector<8x128xf32>
    %c0_5 = arith.constant 0 : index
    %c0_6 = arith.constant 0 : index
    %4 = vector.load %arg4[%c0_5, %c0_6] : memref<128x128xf32, #tpu.memory_space<vmem>>, vector<128x128xf32>
    %cst_7 = arith.constant dense<0.000000e+00> : vector<8x128xf32>
    %5 = tpu.matmul %3, %4, %cst_7 {dimension_numbers = #tpu.dot_dimension_numbers<[1], [0], [0], [1], [0, 0, 1, 1], [], []>} : vector<8x128xf32>, vector<128x128xf32>, vector<8x128xf32> -> vector<8x128xf32>
    %6 = arith.addf %2, %5 : vector<8x128xf32>
    %c0_8 = arith.constant 0 : index
    %c0_9 = arith.constant 0 : index
    %7 = vector.load %arg6[%c0_8, %c0_9] : memref<128x128xf32, #tpu.memory_space<vmem>>, vector<128x128xf32>
    %cst_10 = arith.constant dense<0.000000e+00> : vector<8x128xf32>
    %8 = tpu.matmul %6, %7, %cst_10 {dimension_numbers = #tpu.dot_dimension_numbers<[1], [0], [0], [1], [0, 0, 1, 1], [], []>} : vector<8x128xf32>, vector<128x128xf32>, vector<8x128xf32> -> vector<8x128xf32>
    %c0_11 = arith.constant 0 : index
    %c0_12 = arith.constant 0 : index
    %9 = vector.load %arg3[%c0_11, %c0_12] : memref<8x8xf32, #tpu.memory_space<vmem>>, vector<8x8xf32>
    %c0_13 = arith.constant 0 : index
    %c0_14 = arith.constant 0 : index
    %10 = vector.load %arg7[%c0_13, %c0_14] : memref<8x128xf32, #tpu.memory_space<vmem>>, vector<8x128xf32>
    %cst_15 = arith.constant dense<0.000000e+00> : vector<8x128xf32>
    %11 = tpu.matmul %9, %10, %cst_15 {dimension_numbers = #tpu.dot_dimension_numbers<[1], [0], [0], [1], [0, 0, 1, 1], [], []>} : vector<8x8xf32>, vector<8x128xf32>, vector<8x128xf32> -> vector<8x128xf32>
    %12 = arith.addf %8, %11 : vector<8x128xf32>
    %cst_16 = arith.constant dense<0xFF800000> : vector<8xf32>
    %13 = vector.multi_reduction <maximumf>, %12, %cst_16 [1] : vector<8x128xf32> to vector<8xf32>
    %14 = vector.shape_cast %13 : vector<8xf32> to vector<8x1xf32>
    %15 = vector.broadcast %14 : vector<8x1xf32> to vector<8x128xf32>
    %16 = arith.subf %12, %15 : vector<8x128xf32>
    %17 = math.exp %16 : vector<8x128xf32>
    %cst_17 = arith.constant dense<0.000000e+00> : vector<8xf32>
    %18 = vector.multi_reduction <add>, %17, %cst_17 [1] : vector<8x128xf32> to vector<8xf32>
    %19 = vector.shape_cast %18 : vector<8xf32> to vector<8x1xf32>
    %20 = math.log %19 : vector<8x1xf32>
    %21 = vector.broadcast %20 : vector<8x1xf32> to vector<8x128xf32>
    %22 = arith.subf %16, %21 : vector<8x128xf32>
    %c0_18 = arith.constant 0 : index
    %c0_19 = arith.constant 0 : index
    %23 = vector.load %arg8[%c0_18, %c0_19] : memref<8x128xf32, #tpu.memory_space<vmem>>, vector<8x128xf32>
    tpu.vector_store %arg8[%c0_18, %c0_19], %22 {strides = array<i32>} : memref<8x128xf32, #tpu.memory_space<vmem>>, vector<8x128xf32>,
    return
  }
  func.func @transform_0(%arg0: i32) -> (i32, i32) {
    %c0_i32 = arith.constant 0 : i32
    %c0_i32_0 = arith.constant 0 : i32
    return %arg0, %c0_i32 : i32, i32
  }
  func.func @transform_1(%arg0: i32) -> (i32, i32) {
    %c0_i32 = arith.constant 0 : i32
    %c0_i32_0 = arith.constant 0 : i32
    return %arg0, %c0_i32 : i32, i32
  }
  func.func @transform_2(%arg0: i32) -> (i32, i32) {
    %c0_i32 = arith.constant 0 : i32
    %c0_i32_0 = arith.constant 0 : i32
    return %arg0, %c0_i32 : i32, i32
  }
  func.func @transform_3(%arg0: i32) -> (i32, i32) {
    %c0_i32 = arith.constant 0 : i32
    %c0_i32_0 = arith.constant 0 : i32
    %c0_i32_1 = arith.constant 0 : i32
    return %c0_i32, %c0_i32_0 : i32, i32
  }
  func.func @transform_4(%arg0: i32) -> (i32, i32) {
    %c0_i32 = arith.constant 0 : i32
    %c0_i32_0 = arith.constant 0 : i32
    %c0_i32_1 = arith.constant 0 : i32
    return %c0_i32, %c0_i32_0 : i32, i32
  }
  func.func @transform_5(%arg0: i32) -> (i32, i32) {
    %c0_i32 = arith.constant 0 : i32
    %c0_i32_0 = arith.constant 0 : i32
    %c0_i32_1 = arith.constant 0 : i32
    return %c0_i32, %c0_i32_0 : i32, i32
  }
  func.func @transform_6(%arg0: i32) -> (i32, i32) {
    %c0_i32 = arith.constant 0 : i32
    %c0_i32_0 = arith.constant 0 : i32
    %c0_i32_1 = arith.constant 0 : i32
    return %c0_i32, %c0_i32_0 : i32, i32
  }
  func.func @transform_7(%arg0: i32) -> (i32, i32) {
    %c0_i32 = arith.constant 0 : i32
    %c0_i32_0 = arith.constant 0 : i32
    return %arg0, %c0_i32 : i32, i32
  }
}

module attributes {stable_mosaic.version = 11 : i64} {
  func.func @_topic_kernel(%arg0: i32, %arg1: memref<128x128xf32, #tpu.memory_space<vmem>>, %arg2: memref<128x128xf32, #tpu.memory_space<vmem>>, %arg3: memref<128x128xf32, #tpu.memory_space<vmem>>) attributes {dimension_semantics = [#tpu.dimension_semantics<parallel>], iteration_bounds = array<i64: 1>, scalar_prefetch = 0 : i64, scratch_operands = 0 : i64, tpu.core_type = #tpu.core_type<tc>, window_params = [{pipeline_mode = #tpu.pipeline_mode<synchronous>, transform_indices = @transform_0, window_bounds = array<i64: 128, 128>}, {transform_indices = @transform_1, window_bounds = array<i64: 128, 128>}, {transform_indices = @transform_2, window_bounds = array<i64: 128, 128>}]} {
    %c0 = arith.constant 0 : index
    %c0_0 = arith.constant 0 : index
    %0 = vector.load %arg1[%c0, %c0_0] : memref<128x128xf32, #tpu.memory_space<vmem>>, vector<128x128xf32>
    %c0_1 = arith.constant 0 : index
    %c0_2 = arith.constant 0 : index
    %1 = vector.load %arg2[%c0_1, %c0_2] : memref<128x128xf32, #tpu.memory_space<vmem>>, vector<128x128xf32>
    %cst = arith.constant dense<0.000000e+00> : vector<128x128xf32>
    %2 = tpu.matmul %0, %1, %cst {dimension_numbers = #tpu.dot_dimension_numbers<[1], [0], [0], [1], [0, 0, 1, 1], [], []>} : vector<128x128xf32>, vector<128x128xf32>, vector<128x128xf32> -> vector<128x128xf32>
    %c0_3 = arith.constant 0 : index
    %c0_4 = arith.constant 0 : index
    %3 = vector.load %arg3[%c0_3, %c0_4] : memref<128x128xf32, #tpu.memory_space<vmem>>, vector<128x128xf32>
    tpu.vector_store %arg3[%c0_3, %c0_4], %2 {strides = array<i32>} : memref<128x128xf32, #tpu.memory_space<vmem>>, vector<128x128xf32>,
    return
  }
  func.func @transform_0(%arg0: i32) -> (i32, i32) {
    %c0_i32 = arith.constant 0 : i32
    %c0_i32_0 = arith.constant 0 : i32
    %c0_i32_1 = arith.constant 0 : i32
    return %c0_i32, %c0_i32_0 : i32, i32
  }
  func.func @transform_1(%arg0: i32) -> (i32, i32) {
    %c0_i32 = arith.constant 0 : i32
    %c0_i32_0 = arith.constant 0 : i32
    return %c0_i32, %arg0 : i32, i32
  }
  func.func @transform_2(%arg0: i32) -> (i32, i32) {
    %c0_i32 = arith.constant 0 : i32
    %c0_i32_0 = arith.constant 0 : i32
    return %c0_i32, %arg0 : i32, i32
  }
}

</mosaic_0001>

<bundles_post_ra>
// kernel: decoder_dv_forward.6
= control target key start
LH: loop header
LB: loop body
LE: loop exit
PB: predicated region body
PF: predicated region fallthrough
CT: control target
= control target key end

     0   :  { %v660_v3 = vmov 0.0|0.0   ;;  %vm661_vm0 = vmmov 0   ;;  %v662_v6 = vmov 0.0   ;;  %vm219_vm1 = vcmask 64512   ;;  %s905_s0 = inlined_call_operand.vmem [shape: f32[8,128], index: 0, kind: input, shape index: {}]   ;;  %s906_s1 = inlined_call_operand.vmem [shape: f32[8,128], index: 1, kind: input, shape index: {}]   ;;  %s907_s2 = inlined_call_operand.vmem [shape: f32[8,8], index: 2, kind: input, shape index: {}]   ;;  %s908_s3 = inlined_call_operand.vmem [shape: f32[128,128], index: 3, kind: input, shape index: {}]   ;;  %s909_s4 = inlined_call_operand.vmem [shape: f32[128,128], index: 4, kind: input, shape index: {}]   ;;  %s910_s5 = inlined_call_operand.vmem [shape: f32[128,128], index: 5, kind: input, shape index: {}]   ;;  %s911_s6 = inlined_call_operand.vmem [shape: f32[8,128], index: 6, kind: input, shape index: {}]   ;;  %s912_s7 = inlined_call_operand.hbm [shape: f32[8,128], index: 7, kind: output, shape index: {}]  }
   0x1   :  { %v45_v0 = vld [vmem:[%s908_s3] sm:$0xff]  ;;  %v46_v1 = vld [vmem:[%s908_s3 + $0x8] sm:$0xff]  ;;  %v47_v2 = vld [vmem:[%s908_s3 + $0x10] sm:$0xff]  ;;  %552 = vmatprep.subr.bf16.mxu0 %v660_v3  ;;  %474 = vmatprep.mubr.msk.f32.mxu0 %vm661_vm0, %v662_v6 }
   0x2   :  { %v553_v4 = vpack.c.bf16 %v46_v1, %v45_v0  ;;  %v48_v5 = vld [vmem:[%s908_s3 + $0x18] sm:$0xff]  ;;  %512 = vmatprep.subr.mxu1 %v662_v6  ;;  %514 = vmatprep.mubr.msk.f32.mxu1 %vm661_vm0, %v662_v6  ;;  %v49_v8 = vld [vmem:[%s908_s3 + $0x20] sm:$0xff]  ;;  %v50_v9 = vld [vmem:[%s908_s3 + $0x28] sm:$0xff] }
   0x3   :  { %v556_v7 = vpack.c.bf16 %v48_v5, %v47_v2  ;;  %v559_v10 = vpack.c.bf16 %v50_v9, %v49_v8  ;;  %v51_v11 = vld [vmem:[%s908_s3 + $0x30] sm:$0xff]  ;;  %v52_v12 = vld [vmem:[%s908_s3 + $0x38] sm:$0xff]  ;;  %v53_v13 = vld [vmem:[%s908_s3 + $0x40] sm:$0xff] }
   0x4   :  { %554 = vmatpush3.bf16.msra.mxu0 %v553_v4  ;;  %v562_v14 = vpack.c.bf16 %v52_v12, %v51_v11  ;;  %v54_v15 = vld [vmem:[%s908_s3 + $0x48] sm:$0xff]  ;;  %v218_v16 = vld [vmem:[%s911_s6] sm:$0xff]  ;;  %v203_v20 = vld [vmem:[%s910_s5 + $0x10] sm:$0xff] }
   0x5   :  { %555 = vmatprep.subr.bf16.mxu0 %v660_v3  ;;  %v217_v17 = vld [vmem:[%s907_s2] sm:$0xff]  ;;  %513 = vmatpush3.msra.mxu1 %v218_v16  ;;  %v202_v19 = vld [vmem:[%s910_s5 + $0x8] sm:$0xff]  ;;  %v204_v22 = vld [vmem:[%s910_s5 + $0x18] sm:$0xff]  ;;  %v565_v23 = vpack.c.bf16 %v54_v15, %v53_v13 }
   0x6   :  { %v201_v18 = vld [vmem:[%s910_s5] sm:$0xff]  ;;  %600 = vmatprep.subr.bf16.mxu1 %v660_v3  ;;  %515 = vmatmul.mubr.msk.f32.vlgmr.msra.gmra.mrb[0].mxu1 %vm219_vm1, %v217_v17  ;;  %v55_v24 = vld [vmem:[%s908_s3 + $0x50] sm:$0xff]  ;;  %v604_v25 = vpack.c.bf16 %v204_v22, %v203_v20  ;;  %v56_v26 = vld [vmem:[%s908_s3 + $0x58] sm:$0xff] }
   0x7   :  { %v601_v21 = vpack.c.bf16 %v202_v19, %v201_v18  ;;  %549 = vmatprep.mubr.msk.f32.mxu1 %vm661_vm0, %v662_v6  ;;  %v205_v27 = vld [vmem:[%s910_s5 + $0x20] sm:$0xff]  ;;  %v206_v28 = vld [vmem:[%s910_s5 + $0x28] sm:$0xff] }
   0x8   :  { %557 = vmatpush3.bf16.msra.mxu0 %v556_v7 }
   0x9   :  { %558 = vmatprep.subr.bf16.mxu0 %v660_v3  ;;  %602 = vmatpush3.bf16.msra.mxu1 %v601_v21 }
   0xa   :  { %603 = vmatprep.subr.bf16.mxu1 %v660_v3 }
   0xc   :  { %560 = vmatpush3.bf16.msra.mxu0 %v559_v10 }
   0xd   :  { %561 = vmatprep.subr.bf16.mxu0 %v660_v3 }
  0x10   :  { %563 = vmatpush3.bf16.msra.mxu0 %v562_v14 }
  0x11   :  { %564 = vmatprep.subr.bf16.mxu0 %v660_v3 }
  0x12   :  { %12 = vsyncpa [#allocation3], 0  ;;  %v568_v29 = vpack.c.bf16 %v56_v26, %v55_v24  ;;  %v57_v30 = vld [vmem:[%s908_s3 + $0x60] sm:$0xff]  ;;  %605 = vmatpush3.bf16.msra.mxu1 %v604_v25  ;;  %v607_v31 = vpack.c.bf16 %v206_v28, %v205_v27  ;;  %v58_v32 = vld [vmem:[%s908_s3 + $0x68] sm:$0xff] }
  0x13   :  { %606 = vmatprep.subr.bf16.mxu1 %v660_v3  ;;  %v207_v33 = vld [vmem:[%s910_s5 + $0x30] sm:$0xff]  ;;  %v208_v34 = vld [vmem:[%s910_s5 + $0x38] sm:$0xff]  ;;  %v571_v35 = vpack.c.bf16 %v58_v32, %v57_v30  ;;  %v209_v39 = vld [vmem:[%s910_s5 + $0x40] sm:$0xff] }
  0x14   :  { %566 = vmatpush3.bf16.msra.mxu0 %v565_v23  ;;  %v59_v36 = vld [vmem:[%s908_s3 + $0x70] sm:$0xff]  ;;  %v610_v37 = vpack.c.bf16 %v208_v34, %v207_v33  ;;  %v60_v38 = vld [vmem:[%s908_s3 + $0x78] sm:$0xff]  ;;  %v210_v40 = vld [vmem:[%s910_s5 + $0x48] sm:$0xff] }
  0x15   :  { %567 = vmatprep.subr.bf16.mxu0 %v660_v3  ;;  %v574_v41 = vpack.c.bf16 %v60_v38, %v59_v36  ;;  %v613_v42 = vpack.c.bf16 %v210_v40, %v209_v39  ;;  %v28_v43 = vld [vmem:[%s909_s4] sm:$0xff]  ;;  %v29_v44 = vld [vmem:[%s909_s4 + $0x8] sm:$0xff]  ;;  %v211_v45 = vld [vmem:[%s910_s5 + $0x50] sm:$0xff] }
  0x16   :  { %608 = vmatpush3.bf16.msra.mxu1 %v607_v31  ;;  %v212_v46 = vld [vmem:[%s910_s5 + $0x58] sm:$0xff]  ;;  %v44_v47 = vld [vmem:[%s905_s0] sm:$0xff]  ;;  %v577_v48 = vpack.c.bf16 %v29_v44, %v28_v43  ;;  %v30_v49 = vld [vmem:[%s909_s4 + $0x10] sm:$0xff] }
  0x17   :  { %609 = vmatprep.subr.bf16.mxu1 %v660_v3  ;;  %v31_v50 = vld [vmem:[%s909_s4 + $0x18] sm:$0xff]  ;;  %v616_v51 = vpack.c.bf16 %v212_v46, %v211_v45  ;;  %v213_v52 = vld [vmem:[%s910_s5 + $0x60] sm:$0xff]  ;;  %v214_v53 = vld [vmem:[%s910_s5 + $0x68] sm:$0xff] }
  0x18   :  { %569 = vmatpush3.bf16.msra.mxu0 %v568_v29  ;;  %v580_v54 = vpack.c.bf16 %v31_v50, %v30_v49  ;;  %v32_v55 = vld [vmem:[%s909_s4 + $0x20] sm:$0xff]  ;;  %v33_v56 = vld [vmem:[%s909_s4 + $0x28] sm:$0xff]  ;;  %v619_v57 = vpack.c.bf16 %v214_v53, %v213_v52  ;;  %v215_v58 = vld [vmem:[%s910_s5 + $0x70] sm:$0xff] }
  0x19   :  { %570 = vmatprep.subr.bf16.mxu0 %v660_v3  ;;  %v216_v59 = vld [vmem:[%s910_s5 + $0x78] sm:$0xff]  ;;  %v583_v60 = vpack.c.bf16 %v33_v56, %v32_v55  ;;  %v34_v61 = vld [vmem:[%s909_s4 + $0x30] sm:$0xff]  ;;  %v36_v1 = vld [vmem:[%s909_s4 + $0x40] sm:$0xff] }
  0x1a   :  { %611 = vmatpush3.bf16.msra.mxu1 %v610_v37  ;;  %v35_v62 = vld [vmem:[%s909_s4 + $0x38] sm:$0xff]  ;;  %v622_v63 = vpack.c.bf16 %v216_v59, %v215_v58  ;;  %v37_v2 = vld [vmem:[%s909_s4 + $0x48] sm:$0xff]  ;;  %v38_v5 = vld [vmem:[%s909_s4 + $0x50] sm:$0xff] }
  0x1b   :  { %612 = vmatprep.subr.bf16.mxu1 %v660_v3  ;;  %v586_v0 = vpack.c.bf16 %v35_v62, %v34_v61  ;;  %v589_v4 = vpack.c.bf16 %v37_v2, %v36_v1  ;;  %v40_v8 = vld [vmem:[%s909_s4 + $0x60] sm:$0xff]  ;;  %v41_v9 = vld [vmem:[%s909_s4 + $0x68] sm:$0xff]  ;;  %v42_v11 = vld [vmem:[%s909_s4 + $0x70] sm:$0xff] }
  0x1c   :  { %572 = vmatpush3.bf16.msra.mxu0 %v571_v35  ;;  %v595_v10 = vpack.c.bf16 %v41_v9, %v40_v8  ;;  %v43_v12 = vld [vmem:[%s909_s4 + $0x78] sm:$0xff]  ;;  %v27_v14 = vld [vmem:[%s906_s1] sm:$0xff] }
  0x1d   :  { %573 = vmatprep.subr.bf16.mxu0 %v660_v3  ;;  %v598_v13 = vpack.c.bf16 %v43_v12, %v42_v11 }
  0x1e   :  { %614 = vmatpush3.bf16.msra.mxu1 %v613_v42 }
  0x1f   :  { %615 = vmatprep.subr.bf16.mxu1 %v660_v3 }
  0x20   :  { %575 = vmatpush3.bf16.msra.mxu0 %v574_v41 }
  0x21   :  { %576 = vmatprep.subr.bf16.mxu0 %v660_v3 }
  0x22   :  { %617 = vmatpush3.bf16.msra.mxu1 %v616_v51 }
  0x23   :  { %475 = vmatmul.mubr.f32.vlgmr.msra.gmra.mrb[0].mxu0 %v44_v47  ;;  %618 = vmatprep.subr.bf16.mxu1 %v660_v3 }
  0x24   :  { %578 = vmatpush3.bf16.msra.mxu0 %v577_v48  ;;  %509 = vmatprep.mubr.msk.f32.mxu0 %vm661_vm0, %v662_v6  ;;  %v39_v6 = vld [vmem:[%s909_s4 + $0x58] sm:$0xff]  ;;  %s663_s4 = smov [#allocation2]  }
  0x25   :  { %579 = vmatprep.subr.bf16.mxu0 %v660_v3  ;;  %v592_v7 = vpack.c.bf16 %v39_v6, %v38_v5  ;;  %s380_s25 = sshll.u32 %s663_s4, 4  ;;  %s381_s25 = int_to_ptr.vmem [resolvable:$true] %s380_s25 }
  0x26   :  { %620 = vmatpush3.bf16.msra.mxu1 %v619_v57  ;;  %s636_s1 = scalar_lea.vmem %s381_s25, 128  ;;  %p641_p1 = scmp.lt.s32.totalorder %s381_s25, %s381_s25 }
  0x27   :  { %621 = vmatprep.subr.bf16.mxu1 %v660_v3  ;;  %p637_p0 = scmp.ne.s32.totalorder %s381_s25, %s636_s1  ;;  %p642_p2 = scmp.lt.s32.totalorder %s636_s1, %s636_s1 }
  0x28   :  { %581 = vmatpush3.bf16.msra.mxu0 %v580_v54 }
  0x29   :  { %582 = vmatprep.subr.bf16.mxu0 %v660_v3  ;;  %p643_p3 = por %p642_p2, %p641_p1 }
  0x2a   :  { %623 = vmatpush3.bf16.msra.mxu1 %v622_v63 }
  0x2b   :  { %p644_p4 = pnand %p643_p3, %p637_p0 }
  0x2c   :  { %584 = vmatpush3.bf16.msra.mxu0 %v583_v60 }
  0x2d   :  { %585 = vmatprep.subr.bf16.mxu0 %v660_v3 }
  0x30   :  { %587 = vmatpush3.bf16.msra.mxu0 %v586_v0 }
  0x31   :  { %588 = vmatprep.subr.bf16.mxu0 %v660_v3 }
  0x34   :  { %590 = vmatpush3.bf16.msra.mxu0 %v589_v4 }
  0x35   :  { %591 = vmatprep.subr.bf16.mxu0 %v660_v3 }
  0x38   :  { %593 = vmatpush3.bf16.msra.mxu0 %v592_v7 }
  0x39   :  { %594 = vmatprep.subr.bf16.mxu0 %v660_v3 }
  0x3c   :  { %596 = vmatpush3.bf16.msra.mxu0 %v595_v10 }
  0x3d   :  { %597 = vmatprep.subr.bf16.mxu0 %v660_v3 }
  0x40   :  { %599 = vmatpush3.bf16.msra.mxu0 %v598_v13 }
  0x43   :  { %510 = vmatmul.mubr.f32.vlgmr.msra.gmra.mrb[0].mxu0 %v27_v14 }
 0x116   :  { %v197_v15 = vpop.f32.mrb[0].mxu0 }
 0x117   :  { %v511_v16 = vpop.f32.mrb[1].mxu0  ;;  %550 = vmatmul.mubr.f32.vlgmr.msra.gmra.mrb[0].mxu1 %v197_v15 }
 0x1ea   :  { %v359_v17 = vpop.f32.mrb[0].mxu1 }
 0x1eb   :  { %363 = vmax.xlane.f32.xlu0 %v359_v17  ;;  %v551_v18 = vpop.f32.mrb[1].mxu1 }
 0x278   :  { %v364_v19 = vpop.xlane.xlu0 %363 }
 0x279   :  { %v365_v20 = vsub.f32 %v359_v17, %v364_v19 }
 0x27b   :  { %v366_v21 = vmul.f32 1.442695, %v365_v20 }
 0x27d   :  { %632 = vpow2.f32 %v366_v21 }
 0x287   :  { %v633_v22 = vpop.eup %632 }
 0x288   :  { %368 = vadd.xlane.f32.xlu0 %v633_v22 }
 0x315   :  { %v369_v23 = vpop.xlane.xlu0 %368 }
 0x316   :  { %634 = vlog2.f32 %v369_v23 }
 0x320   :  { %v635_v3 = vpop.eup %634 }
 0x321   :  { %v371_v24 = vmul.f32 0.6931472, %v635_v3 }
 0x323   :  { %v372_v25 = vsub.f32 %v365_v20, %v371_v24 }
 0x325   :  { %373 = vst [vmem:[#allocation2] sm:$0xff] %v372_v25 }
 0x326   :  { %647 = shalt.err (!%p644_p4)
}
 0x327   :  { %s648_s28 = scalar_lea.hbm %s912_s7, 128 }
 0x328   :  { %p649_p5 = scmp.ne.s32.totalorder %s912_s7, %s648_s28  ;;  %p652_p6 = scmp.lt.u32.totalorder %s648_s28, %s912_s7 }
 0x32a   :  { %p654_p7 = pnand %p652_p6, %p649_p5 }
 0x32c   :  { %657 = shalt.err (!%p654_p7)
}
 0x32d   :  { %383 = dma.vmem_to_hbm [thread:$0]  %s381_s25, 128, %s912_s7, [#allocation3]  }
 0x32e   :  { %658 = dma.done.wait [#allocation3], 128  }
 0x32f   :  { %659 = vsyncadd [#allocation3], 4294967168 }
 0x330   :  { %387 = vsyncpa [#allocation3], 1 }

// kernel: decoder_dv_forward.4
= control target key start
LH: loop header
LB: loop body
LE: loop exit
PB: predicated region body
PF: predicated region fallthrough
CT: control target
= control target key end

     0   :  { %s503_s1 = inlined_call_operand.vmem [shape: f32[128,128], index: 1, kind: input, shape index: {}]   ;;  %s504_s0 = inlined_call_operand.vmem [shape: f32[128,128], index: 0, kind: input, shape index: {}]   ;;  %s505_s2 = inlined_call_operand.vmem [shape: f32[128,128], index: 2, kind: output, shape index: {}]  }
   0x1   :  { %v27_v0 = vld [vmem:[%s503_s1] sm:$0xff]  ;;  %v28_v1 = vld [vmem:[%s503_s1 + $0x8] sm:$0xff]  ;;  %v29_v2 = vld [vmem:[%s503_s1 + $0x10] sm:$0xff] }
   0x2   :  { %v296_v3 = vpack.c.bf16 %v28_v1, %v27_v0  ;;  %v30_v4 = vld [vmem:[%s503_s1 + $0x18] sm:$0xff]  ;;  %v31_v6 = vld [vmem:[%s503_s1 + $0x20] sm:$0xff]  ;;  %v32_v7 = vld [vmem:[%s503_s1 + $0x28] sm:$0xff] }
   0x3   :  { %v300_v5 = vpack.c.bf16 %v30_v4, %v29_v2  ;;  %v304_v8 = vpack.c.bf16 %v32_v7, %v31_v6  ;;  %v11_v9 = vld [vmem:[%s504_s0] sm:$0xff]  ;;  %v33_v11 = vld [vmem:[%s503_s1 + $0x30] sm:$0xff]  ;;  %v34_v12 = vld [vmem:[%s503_s1 + $0x38] sm:$0xff] }
   0x4   :  { %297 = vmatprep.subr.bf16.mxu0 %v296_v3  ;;  %328 = vmatprep.subr.bf16.mxu1 %v296_v3  ;;  %v19_v10 = vld [vmem:[%s504_s0 + $0x40] sm:$0xff]  ;;  %v308_v13 = vpack.c.bf16 %v34_v12, %v33_v11  ;;  %v36_v15 = vld [vmem:[%s503_s1 + $0x48] sm:$0xff]  ;;  %v37_v17 = vld [vmem:[%s503_s1 + $0x50] sm:$0xff] }
   0x5   :  { %299 = vmatpush3.bf16.msra.mxu0 %v296_v3  ;;  %336 = vmatpush3.bf16.msra.mxu1 %v296_v3  ;;  %v35_v14 = vld [vmem:[%s503_s1 + $0x40] sm:$0xff]  ;;  %v38_v18 = vld [vmem:[%s503_s1 + $0x58] sm:$0xff]  ;;  %v40_v21 = vld [vmem:[%s503_s1 + $0x68] sm:$0xff] }
   0x6   :  { %301 = vmatprep.subr.bf16.mxu0 %v300_v5  ;;  %329 = vmatprep.subr.bf16.mxu1 %v300_v5  ;;  %v312_v16 = vpack.c.bf16 %v36_v15, %v35_v14  ;;  %v316_v19 = vpack.c.bf16 %v38_v18, %v37_v17  ;;  %v39_v20 = vld [vmem:[%s503_s1 + $0x60] sm:$0xff]  ;;  %v41_v23 = vld [vmem:[%s503_s1 + $0x70] sm:$0xff]  ;;  %v42_v24 = vld [vmem:[%s503_s1 + $0x78] sm:$0xff] }
   0x7   :  { %272 = vmatprep.mubr.f32.mxu0 %v11_v9  ;;  %284 = vmatprep.mubr.f32.mxu1 %v19_v10  ;;  %v320_v22 = vpack.c.bf16 %v40_v21, %v39_v20  ;;  %v324_v25 = vpack.c.bf16 %v42_v24, %v41_v23  ;;  %v12_v26 = vld [vmem:[%s504_s0 + $0x8] sm:$0xff]  ;;  %v13_v28 = vld [vmem:[%s504_s0 + $0x10] sm:$0xff]  ;;  %v14_v30 = vld [vmem:[%s504_s0 + $0x18] sm:$0xff] }
   0x8   :  { %v20_v27 = vld [vmem:[%s504_s0 + $0x48] sm:$0xff]  ;;  %v21_v29 = vld [vmem:[%s504_s0 + $0x50] sm:$0xff]  ;;  %v22_v31 = vld [vmem:[%s504_s0 + $0x58] sm:$0xff] }
   0x9   :  { %303 = vmatpush3.bf16.msra.mxu0 %v300_v5  ;;  %337 = vmatpush3.bf16.msra.mxu1 %v300_v5  ;;  %v15_v32 = vld [vmem:[%s504_s0 + $0x20] sm:$0xff]  ;;  %v16_v34 = vld [vmem:[%s504_s0 + $0x28] sm:$0xff]  ;;  %v17_v36 = vld [vmem:[%s504_s0 + $0x30] sm:$0xff] }
   0xa   :  { %305 = vmatprep.subr.bf16.mxu0 %v304_v8  ;;  %330 = vmatprep.subr.bf16.mxu1 %v304_v8  ;;  %v23_v33 = vld [vmem:[%s504_s0 + $0x60] sm:$0xff]  ;;  %v24_v35 = vld [vmem:[%s504_s0 + $0x68] sm:$0xff]  ;;  %v25_v37 = vld [vmem:[%s504_s0 + $0x70] sm:$0xff] }
   0xb   :  { %v18_v38 = vld [vmem:[%s504_s0 + $0x38] sm:$0xff] }
   0xc   :  { %v26_v39 = vld [vmem:[%s504_s0 + $0x78] sm:$0xff] }
   0xd   :  { %307 = vmatpush3.bf16.msra.mxu0 %v304_v8  ;;  %338 = vmatpush3.bf16.msra.mxu1 %v304_v8 }
   0xe   :  { %309 = vmatprep.subr.bf16.mxu0 %v308_v13  ;;  %331 = vmatprep.subr.bf16.mxu1 %v308_v13 }
  0x11   :  { %311 = vmatpush3.bf16.msra.mxu0 %v308_v13  ;;  %339 = vmatpush3.bf16.msra.mxu1 %v308_v13 }
  0x12   :  { %313 = vmatprep.subr.bf16.mxu0 %v312_v16  ;;  %332 = vmatprep.subr.bf16.mxu1 %v312_v16 }
  0x15   :  { %315 = vmatpush3.bf16.msra.mxu0 %v312_v16  ;;  %340 = vmatpush3.bf16.msra.mxu1 %v312_v16 }
  0x16   :  { %317 = vmatprep.subr.bf16.mxu0 %v316_v19  ;;  %333 = vmatprep.subr.bf16.mxu1 %v316_v19 }
  0x19   :  { %319 = vmatpush3.bf16.msra.mxu0 %v316_v19  ;;  %341 = vmatpush3.bf16.msra.mxu1 %v316_v19 }
  0x1a   :  { %321 = vmatprep.subr.bf16.mxu0 %v320_v22  ;;  %334 = vmatprep.subr.bf16.mxu1 %v320_v22 }
  0x1d   :  { %323 = vmatpush3.bf16.msra.mxu0 %v320_v22  ;;  %342 = vmatpush3.bf16.msra.mxu1 %v320_v22 }
  0x1e   :  { %325 = vmatprep.subr.bf16.mxu0 %v324_v25  ;;  %335 = vmatprep.subr.bf16.mxu1 %v324_v25 }
  0x21   :  { %327 = vmatpush3.bf16.msra.mxu0 %v324_v25  ;;  %343 = vmatpush3.bf16.msra.mxu1 %v324_v25 }
  0x24   :  { %273 = vmatmul.mubr.f32.vlgmr.msra.gmra.mrb[0].mxu0 %v12_v26  ;;  %285 = vmatmul.mubr.f32.vlgmr.msra.gmra.mrb[0].mxu1 %v20_v27 }
  0x25   :  { %275 = vmatprep.mubr.f32.mxu0 %v13_v28  ;;  %287 = vmatprep.mubr.f32.mxu1 %v21_v29 }
  0x28   :  { %276 = vmatmul.mubr.f32.gmra.mrb[2].mxu0 %v14_v30  ;;  %288 = vmatmul.mubr.f32.gmra.mrb[2].mxu1 %v22_v31 }
  0x29   :  { %278 = vmatprep.mubr.f32.mxu0 %v15_v32  ;;  %290 = vmatprep.mubr.f32.mxu1 %v23_v33 }
  0x2c   :  { %279 = vmatmul.mubr.f32.gmra.mrb[4].mxu0 %v16_v34  ;;  %291 = vmatmul.mubr.f32.gmra.mrb[4].mxu1 %v24_v35 }
  0x2d   :  { %281 = vmatprep.mubr.f32.mxu0 %v17_v36  ;;  %293 = vmatprep.mubr.f32.mxu1 %v25_v37 }
  0x30   :  { %282 = vmatmul.mubr.f32.gmra.mrb[6].mxu0 %v18_v38  ;;  %294 = vmatmul.mubr.f32.gmra.mrb[6].mxu1 %v26_v39 }
  0xf7   :  { %v274_v40 = vpop.f32.mrb[0].mxu0  ;;  %v286_v41 = vpop.f32.mrb[0].mxu1 }
  0xf8   :  { %189 = vst [vmem:[%s505_s2 + $0x8] sm:$0xff] %v274_v40  ;;  %197 = vst [vmem:[%s505_s2 + $0x48] sm:$0xff] %v286_v41  ;;  %v109_v42 = vpop.f32.mrb[1].mxu0  ;;  %v149_v43 = vpop.f32.mrb[1].mxu1 }
  0xf9   :  { %188 = vst [vmem:[%s505_s2] sm:$0xff] %v109_v42  ;;  %196 = vst [vmem:[%s505_s2 + $0x40] sm:$0xff] %v149_v43 }
  0xfb   :  { %v277_v44 = vpop.f32.mrb[2].mxu0  ;;  %v289_v45 = vpop.f32.mrb[2].mxu1 }
  0xfc   :  { %191 = vst [vmem:[%s505_s2 + $0x18] sm:$0xff] %v277_v44  ;;  %199 = vst [vmem:[%s505_s2 + $0x58] sm:$0xff] %v289_v45  ;;  %v119_v46 = vpop.f32.mrb[3].mxu0  ;;  %v159_v47 = vpop.f32.mrb[3].mxu1 }
  0xfd   :  { %190 = vst [vmem:[%s505_s2 + $0x10] sm:$0xff] %v119_v46  ;;  %198 = vst [vmem:[%s505_s2 + $0x50] sm:$0xff] %v159_v47 }
  0xff   :  { %v280_v48 = vpop.f32.mrb[4].mxu0  ;;  %v292_v49 = vpop.f32.mrb[4].mxu1 }
 0x100   :  { %193 = vst [vmem:[%s505_s2 + $0x28] sm:$0xff] %v280_v48  ;;  %201 = vst [vmem:[%s505_s2 + $0x68] sm:$0xff] %v292_v49  ;;  %v129_v50 = vpop.f32.mrb[5].mxu0  ;;  %v169_v51 = vpop.f32.mrb[5].mxu1 }
 0x101   :  { %192 = vst [vmem:[%s505_s2 + $0x20] sm:$0xff] %v129_v50  ;;  %200 = vst [vmem:[%s505_s2 + $0x60] sm:$0xff] %v169_v51 }
 0x103   :  { %v283_v52 = vpop.f32.mrb[6].mxu0  ;;  %v295_v53 = vpop.f32.mrb[6].mxu1 }
 0x104   :  { %195 = vst [vmem:[%s505_s2 + $0x38] sm:$0xff] %v283_v52  ;;  %203 = vst [vmem:[%s505_s2 + $0x78] sm:$0xff] %v295_v53  ;;  %v139_v54 = vpop.f32.mrb[7].mxu0  ;;  %v179_v55 = vpop.f32.mrb[7].mxu1 }
 0x105   :  { %194 = vst [vmem:[%s505_s2 + $0x30] sm:$0xff] %v139_v54  ;;  %202 = vst [vmem:[%s505_s2 + $0x70] sm:$0xff] %v179_v55 }

</bundles_post_ra>
